<compile_context>
chip_gen: v6e
topology: v6e:2x2x1
jax: 0.10.0
libtpu: 0.0.40
codegen_flags: <defaults>
</compile_context>

<pallas_src>
import functools

import jax
import jax.numpy as jnp
from jax.experimental import pallas as pl
from jax.experimental.pallas import tpu as pltpu


LEAKY_SLOPE = 0.01  # nn.LeakyReLU() default negative_slope


def _material_kernel(*refs, num_hidden, z_min, z_range, matmul_dtype):
    """Fused MLP forward for one batch tile (batch on the lane axis).

    refs layout:
      refs[0]                      : x tile           (inputDim, TILE_N)
      refs[1 + 2*l], refs[2 + 2*l] : W_l (out,in), b_l (out,1)
                                     l = 0..num_hidden   (last = output layer)
      refs[-1]                     : output tile      (outputDim, TILE_N)
    """
    x_ref = refs[0]
    out_ref = refs[-1]

    # Activations stay f32 (safe on v5e VPU/EUP); matmul operands may be cast
    # to bf16 on v6e/v7x via `matmul_dtype`, with f32 MXU accumulation.
    h = x_ref[...].astype(jnp.float32)

    # Hidden layers: Linear -> LeakyReLU
    for l in range(num_hidden):
        w = refs[1 + 2 * l][...]
        b = refs[2 + 2 * l][...].astype(jnp.float32)
        h = jnp.dot(
            w.astype(matmul_dtype),
            h.astype(matmul_dtype),
            preferred_element_type=jnp.float32,
        ) + b
        # LeakyReLU as a single mul+max (cheaper than compare+select).
        h = jnp.maximum(h, LEAKY_SLOPE * h)

    # Output layer: Linear -> zMin + zRange * sigmoid(.)
    w_out = refs[1 + 2 * num_hidden][...]
    b_out = refs[2 + 2 * num_hidden][...].astype(jnp.float32)
    op = jnp.dot(
        w_out.astype(matmul_dtype),
        h.astype(matmul_dtype),
        preferred_element_type=jnp.float32,
    ) + b_out
    z = z_min + z_range * jax.nn.sigmoid(op)

    out_ref[...] = z.astype(out_ref.dtype)


def material_network_forward(
    x, weights, biases, z_min, z_range, *, tile_n=512, matmul_dtype=jnp.float32
):
    """Run the fused MaterialNetwork MLP as a single pallas_call.

    x       : (N, inputDim) float32
    weights : list of (out_features, in_features) float32 arrays (PyTorch layout),
              hidden layers first, output layer last
    biases  : list of (out_features,) or (out_features, 1) float32 arrays
    matmul_dtype : set to jnp.bfloat16 on v6e/v7x to halve matmul-operand width;
                   keep jnp.float32 on v5e (no bf16 VPU there) or for exactness.
    """
    n, input_dim = x.shape
    num_layers_total = len(weights)  # num_hidden + 1
    num_hidden = num_layers_total - 1
    out_dim = weights[-1].shape[0]

    # Batch tiles sit on the lane axis -> must be lane-aligned (multiple of 128).
    tile_n = max(128, (tile_n // 128) * 128)
    n_pad = pl.cdiv(n, tile_n) * tile_n

    # Transpose so batch is the last (lane) dim, zero-pad the batch tail.
    x_t = jnp.pad(x.T, ((0, 0), (0, n_pad - n)))

    # x tile over (padded) batch; weights/biases passed whole (block == array).
    in_specs = [pl.BlockSpec((input_dim, tile_n), lambda i: (0, i))]
    param_inputs = []
    for w, b in zip(weights, biases):
        b2 = b.reshape(-1, 1)
        in_specs.append(pl.BlockSpec(w.shape, lambda i: (0, 0)))
        in_specs.append(pl.BlockSpec(b2.shape, lambda i: (0, 0)))
        param_inputs.extend([w, b2])

    out_spec = pl.BlockSpec((out_dim, tile_n), lambda i: (0, i))

    kernel = functools.partial(
        _material_kernel,
        num_hidden=num_hidden,
        z_min=float(z_min),
        z_range=float(z_range),
        matmul_dtype=matmul_dtype,
    )

    # Advisory cost estimate so XLA can overlap this small kernel with neighbors.
    flops = 2 * n_pad * sum(int(w.shape[0]) * int(w.shape[1]) for w in weights)
    bytes_accessed = (
        x_t.size * x_t.dtype.itemsize
        + n_pad * out_dim * 4
        + sum(int(w.size) * w.dtype.itemsize for w in weights)
        + sum(int(b.size) * 4 for b in biases)
    )
    cost = pl.CostEstimate(
        flops=flops,
        transcendentals=n_pad * out_dim,  # sigmoid -> exp on EUP
        bytes_accessed=bytes_accessed,
    )

    z_t = pl.pallas_call(
        kernel,
        grid_spec=pltpu.PrefetchScalarGridSpec(
            num_scalar_prefetch=0,
            grid=(n_pad // tile_n,),
            in_specs=in_specs,
            out_specs=out_spec,
        ),
        out_shape=jax.ShapeDtypeStruct((out_dim, n_pad), jnp.float32),
        compiler_params=pltpu.CompilerParams(
            dimension_semantics=("parallel",)  # shards batch tiles across TCs (v7x)
        ),
        cost_estimate=cost,
    )(x_t, *param_inputs)

    # Back to (N, outputDim), dropping the padded batch tail.
    return z_t.T[:n]


def init_params(key, nn_settings):
    """Deterministic parameter init mirroring the PyTorch module's __init__.

    Weights are kept in PyTorch layout (out_features, in_features)."""
    input_dim = nn_settings["inputDim"]
    hidden = nn_settings["numNeuronsPerLyr"]
    num_layers = nn_settings["numLayers"]
    output_dim = nn_settings["outputDim"]

    weights, biases = [], []
    current_dim = input_dim
    for _ in range(num_layers):
        key, sub = jax.random.split(key)
        # xavier_normal_: std = sqrt(2 / (fan_in + fan_out)); bias = 0
        std = (2.0 / (current_dim + hidden)) ** 0.5
        w = std * jax.random.normal(sub, (hidden, current_dim), jnp.float32)
        weights.append(w)
        biases.append(jnp.zeros((hidden,), jnp.float32))
        current_dim = hidden

    # Final layer: PyTorch default Linear init (uniform in +/- 1/sqrt(fan_in)).
    key, kw, kb = jax.random.split(key, 3)
    bound = 1.0 / (current_dim ** 0.5)
    w_out = jax.random.uniform(
        kw, (output_dim, current_dim), jnp.float32, -bound, bound
    )
    b_out = jax.random.uniform(kb, (output_dim,), jnp.float32, -bound, bound)
    weights.append(w_out)
    biases.append(b_out)
    return weights, biases


def _reference_forward(x, weights, biases, z_min, z_range):
    """Pure-JAX reference matching the PyTorch forward pass."""
    h = x
    for w, b in zip(weights[:-1], biases[:-1]):
        h = h @ w.T + b.reshape(1, -1)
        h = jnp.where(h > 0, h, LEAKY_SLOPE * h)
    op = h @ weights[-1].T + biases[-1].reshape(1, -1)
    return z_min + z_range * jax.nn.sigmoid(op)


if __name__ == "__main__":
    nn_settings = {
        "inputDim": 4,
        "numNeuronsPerLyr": 32,
        "numLayers": 3,
        "outputDim": 2,
        "zMin": 0.1,
        "zRange": 0.9,
    }

    key = jax.random.PRNGKey(0)
    key, kx = jax.random.split(key)
    x = jax.random.normal(kx, (16, nn_settings["inputDim"]), jnp.float32)

    weights, biases = init_params(key, nn_settings)

    z = material_network_forward(
        x, weights, biases, nn_settings["zMin"], nn_settings["zRange"]
    )
    z = jax.block_until_ready(z)

    # Sanity: shape, output range, and match against the pure-JAX reference.
    assert z.shape == (16, nn_settings["outputDim"])
    assert bool(jnp.all(z >= nn_settings["zMin"] - 1e-5))
    assert bool(jnp.all(z <= nn_settings["zMin"] + nn_settings["zRange"] + 1e-5))

    z_ref = _reference_forward(
        x, weights, biases, nn_settings["zMin"], nn_settings["zRange"]
    )
    assert bool(jnp.allclose(z, z_ref, atol=1e-5, rtol=1e-5))

    print("KERNEL_OK")
</pallas_src>

<mosaic_0001>
module attributes {stable_mosaic.version = 11 : i64} {
  func.func @_material_kernel(%arg0: i32, %arg1: memref<4x512xf32, #tpu.memory_space<vmem>>, %arg2: memref<32x4xf32, #tpu.memory_space<vmem>>, %arg3: memref<32x1xf32, #tpu.memory_space<vmem>>, %arg4: memref<32x32xf32, #tpu.memory_space<vmem>>, %arg5: memref<32x1xf32, #tpu.memory_space<vmem>>, %arg6: memref<32x32xf32, #tpu.memory_space<vmem>>, %arg7: memref<32x1xf32, #tpu.memory_space<vmem>>, %arg8: memref<2x32xf32, #tpu.memory_space<vmem>>, %arg9: memref<2x1xf32, #tpu.memory_space<vmem>>, %arg10: memref<2x512xf32, #tpu.memory_space<vmem>>) attributes {dimension_semantics = [#tpu.dimension_semantics<parallel>], iteration_bounds = array<i64: 1>, scalar_prefetch = 0 : i64, scratch_operands = 0 : i64, tpu.core_type = #tpu.core_type<tc>, window_params = [{transform_indices = @transform_0, window_bounds = array<i64: 4, 512>}, {pipeline_mode = #tpu.pipeline_mode<synchronous>, transform_indices = @transform_1, window_bounds = array<i64: 32, 4>}, {pipeline_mode = #tpu.pipeline_mode<synchronous>, transform_indices = @transform_2, window_bounds = array<i64: 32, 1>}, {pipeline_mode = #tpu.pipeline_mode<synchronous>, transform_indices = @transform_3, window_bounds = array<i64: 32, 32>}, {pipeline_mode = #tpu.pipeline_mode<synchronous>, transform_indices = @transform_4, window_bounds = array<i64: 32, 1>}, {pipeline_mode = #tpu.pipeline_mode<synchronous>, transform_indices = @transform_5, window_bounds = array<i64: 32, 32>}, {pipeline_mode = #tpu.pipeline_mode<synchronous>, transform_indices = @transform_6, window_bounds = array<i64: 32, 1>}, {pipeline_mode = #tpu.pipeline_mode<synchronous>, transform_indices = @transform_7, window_bounds = array<i64: 2, 32>}, {pipeline_mode = #tpu.pipeline_mode<synchronous>, transform_indices = @transform_8, window_bounds = array<i64: 2, 1>}, {transform_indices = @transform_9, window_bounds = array<i64: 2, 512>}]} {
    %c0 = arith.constant 0 : index
    %c0_0 = arith.constant 0 : index
    %0 = vector.load %arg1[%c0, %c0_0] : memref<4x512xf32, #tpu.memory_space<vmem>>, vector<4x512xf32>
    %c0_1 = arith.constant 0 : index
    %c0_2 = arith.constant 0 : index
    %1 = vector.load %arg2[%c0_1, %c0_2] : memref<32x4xf32, #tpu.memory_space<vmem>>, vector<32x4xf32>
    %c0_3 = arith.constant 0 : index
    %c0_4 = arith.constant 0 : index
    %2 = vector.load %arg3[%c0_3, %c0_4] : memref<32x1xf32, #tpu.memory_space<vmem>>, vector<32x1xf32>
    %cst = arith.constant dense<0.000000e+00> : vector<32x512xf32>
    %3 = tpu.matmul %1, %0, %cst {dimension_numbers = #tpu.dot_dimension_numbers<[1], [0], [0], [1], [0, 0, 1, 1], [], []>} : vector<32x4xf32>, vector<4x512xf32>, vector<32x512xf32> -> vector<32x512xf32>
    %4 = vector.broadcast %2 : vector<32x1xf32> to vector<32x512xf32>
    %5 = arith.addf %3, %4 : vector<32x512xf32>
    %cst_5 = arith.constant 0.00999999977 : f32
    %6 = vector.broadcast %cst_5 : f32 to vector<32x512xf32>
    %7 = arith.mulf %6, %5 : vector<32x512xf32>
    %8 = arith.maximumf %5, %7 : vector<32x512xf32>
    %c0_6 = arith.constant 0 : index
    %c0_7 = arith.constant 0 : index
    %9 = vector.load %arg4[%c0_6, %c0_7] : memref<32x32xf32, #tpu.memory_space<vmem>>, vector<32x32xf32>
    %c0_8 = arith.constant 0 : index
    %c0_9 = arith.constant 0 : index
    %10 = vector.load %arg5[%c0_8, %c0_9] : memref<32x1xf32, #tpu.memory_space<vmem>>, vector<32x1xf32>
    %cst_10 = arith.constant dense<0.000000e+00> : vector<32x512xf32>
    %11 = tpu.matmul %9, %8, %cst_10 {dimension_numbers = #tpu.dot_dimension_numbers<[1], [0], [0], [1], [0, 0, 1, 1], [], []>} : vector<32x32xf32>, vector<32x512xf32>, vector<32x512xf32> -> vector<32x512xf32>
    %12 = vector.broadcast %10 : vector<32x1xf32> to vector<32x512xf32>
    %13 = arith.addf %11, %12 : vector<32x512xf32>
    %cst_11 = arith.constant 0.00999999977 : f32
    %14 = vector.broadcast %cst_11 : f32 to vector<32x512xf32>
    %15 = arith.mulf %14, %13 : vector<32x512xf32>
    %16 = arith.maximumf %13, %15 : vector<32x512xf32>
    %c0_12 = arith.constant 0 : index
    %c0_13 = arith.constant 0 : index
    %17 = vector.load %arg6[%c0_12, %c0_13] : memref<32x32xf32, #tpu.memory_space<vmem>>, vector<32x32xf32>
    %c0_14 = arith.constant 0 : index
    %c0_15 = arith.constant 0 : index
    %18 = vector.load %arg7[%c0_14, %c0_15] : memref<32x1xf32, #tpu.memory_space<vmem>>, vector<32x1xf32>
    %cst_16 = arith.constant dense<0.000000e+00> : vector<32x512xf32>
    %19 = tpu.matmul %17, %16, %cst_16 {dimension_numbers = #tpu.dot_dimension_numbers<[1], [0], [0], [1], [0, 0, 1, 1], [], []>} : vector<32x32xf32>, vector<32x512xf32>, vector<32x512xf32> -> vector<32x512xf32>
    %20 = vector.broadcast %18 : vector<32x1xf32> to vector<32x512xf32>
    %21 = arith.addf %19, %20 : vector<32x512xf32>
    %cst_17 = arith.constant 0.00999999977 : f32
    %22 = vector.broadcast %cst_17 : f32 to vector<32x512xf32>
    %23 = arith.mulf %22, %21 : vector<32x512xf32>
    %24 = arith.maximumf %21, %23 : vector<32x512xf32>
    %c0_18 = arith.constant 0 : index
    %c0_19 = arith.constant 0 : index
    %25 = vector.load %arg8[%c0_18, %c0_19] : memref<2x32xf32, #tpu.memory_space<vmem>>, vector<2x32xf32>
    %c0_20 = arith.constant 0 : index
    %c0_21 = arith.constant 0 : index
    %26 = vector.load %arg9[%c0_20, %c0_21] : memref<2x1xf32, #tpu.memory_space<vmem>>, vector<2x1xf32>
    %cst_22 = arith.constant dense<0.000000e+00> : vector<2x512xf32>
    %27 = tpu.matmul %25, %24, %cst_22 {dimension_numbers = #tpu.dot_dimension_numbers<[1], [0], [0], [1], [0, 0, 1, 1], [], []>} : vector<2x32xf32>, vector<32x512xf32>, vector<2x512xf32> -> vector<2x512xf32>
    %28 = vector.broadcast %26 : vector<2x1xf32> to vector<2x512xf32>
    %29 = arith.addf %27, %28 : vector<2x512xf32>
    %30 = arith.negf %29 : vector<2x512xf32>
    %31 = math.exp %30 : vector<2x512xf32>
    %cst_23 = arith.constant 1.000000e+00 : f32
    %32 = vector.broadcast %cst_23 : f32 to vector<2x512xf32>
    %33 = arith.addf %32, %31 : vector<2x512xf32>
    %34 = arith.divf %32, %33 : vector<2x512xf32>
    %cst_24 = arith.constant 0.899999976 : f32
    %35 = vector.broadcast %cst_24 : f32 to vector<2x512xf32>
    %36 = arith.mulf %35, %34 : vector<2x512xf32>
    %cst_25 = arith.constant 1.000000e-01 : f32
    %37 = vector.broadcast %cst_25 : f32 to vector<2x512xf32>
    %38 = arith.addf %37, %36 : vector<2x512xf32>
    %c0_26 = arith.constant 0 : index
    %c0_27 = arith.constant 0 : index
    %39 = vector.load %arg10[%c0_26, %c0_27] : memref<2x512xf32, #tpu.memory_space<vmem>>, vector<2x512xf32>
    tpu.vector_store %arg10[%c0_26, %c0_27], %38 {strides = array<i32>} : memref<2x512xf32, #tpu.memory_space<vmem>>, vector<2x512xf32>,
    return
  }
  func.func @transform_0(%arg0: i32) -> (i32, i32) {
    %c0_i32 = arith.constant 0 : i32
    %c0_i32_0 = arith.constant 0 : i32
    return %c0_i32, %arg0 : i32, i32
  }
  func.func @transform_1(%arg0: i32) -> (i32, i32) {
    %c0_i32 = arith.constant 0 : i32
    %c0_i32_0 = arith.constant 0 : i32
    %c0_i32_1 = arith.constant 0 : i32
    return %c0_i32, %c0_i32_0 : i32, i32
  }
  func.func @transform_2(%arg0: i32) -> (i32, i32) {
    %c0_i32 = arith.constant 0 : i32
    %c0_i32_0 = arith.constant 0 : i32
    %c0_i32_1 = arith.constant 0 : i32
    return %c0_i32, %c0_i32_0 : i32, i32
  }
  func.func @transform_3(%arg0: i32) -> (i32, i32) {
    %c0_i32 = arith.constant 0 : i32
    %c0_i32_0 = arith.constant 0 : i32
    %c0_i32_1 = arith.constant 0 : i32
    return %c0_i32, %c0_i32_0 : i32, i32
  }
  func.func @transform_4(%arg0: i32) -> (i32, i32) {
    %c0_i32 = arith.constant 0 : i32
    %c0_i32_0 = arith.constant 0 : i32
    %c0_i32_1 = arith.constant 0 : i32
    return %c0_i32, %c0_i32_0 : i32, i32
  }
  func.func @transform_5(%arg0: i32) -> (i32, i32) {
    %c0_i32 = arith.constant 0 : i32
    %c0_i32_0 = arith.constant 0 : i32
    %c0_i32_1 = arith.constant 0 : i32
    return %c0_i32, %c0_i32_0 : i32, i32
  }
  func.func @transform_6(%arg0: i32) -> (i32, i32) {
    %c0_i32 = arith.constant 0 : i32
    %c0_i32_0 = arith.constant 0 : i32
    %c0_i32_1 = arith.constant 0 : i32
    return %c0_i32, %c0_i32_0 : i32, i32
  }
  func.func @transform_7(%arg0: i32) -> (i32, i32) {
    %c0_i32 = arith.constant 0 : i32
    %c0_i32_0 = arith.constant 0 : i32
    %c0_i32_1 = arith.constant 0 : i32
    return %c0_i32, %c0_i32_0 : i32, i32
  }
  func.func @transform_8(%arg0: i32) -> (i32, i32) {
    %c0_i32 = arith.constant 0 : i32
    %c0_i32_0 = arith.constant 0 : i32
    %c0_i32_1 = arith.constant 0 : i32
    return %c0_i32, %c0_i32_0 : i32, i32
  }
  func.func @transform_9(%arg0: i32) -> (i32, i32) {
    %c0_i32 = arith.constant 0 : i32
    %c0_i32_0 = arith.constant 0 : i32
    return %c0_i32, %arg0 : i32, i32
  }
}

</mosaic_0001>

<bundles_post_ra>
// kernel: tpu_custom_call.1
= control target key start
LH: loop header
LB: loop body
LE: loop exit
PB: predicated region body
PF: predicated region fallthrough
CT: control target
= control target key end

     0   :  { %vm80_vm0 = vcmask 1043456   ;;  %v1101_v4 = vmov 0.0   ;;  %vm67_vm1 = vcmask 31744   ;;  %v1102_v6 = vmov 0   ;;  %s1294_s0 = inlined_call_operand.vmem [shape: f32[4,512], index: 0, kind: input, shape index: {}]   ;;  %s1295_s1 = inlined_call_operand.vmem [shape: f32[32,4], index: 1, kind: input, shape index: {}]   ;;  %s1296_s2 = inlined_call_operand.vmem [shape: f32[32,1], index: 2, kind: input, shape index: {}]   ;;  %s1297_s3 = inlined_call_operand.vmem [shape: f32[32,32], index: 3, kind: input, shape index: {}]   ;;  %s1298_s4 = inlined_call_operand.vmem [shape: f32[32,1], index: 4, kind: input, shape index: {}]   ;;  %s1299_s5 = inlined_call_operand.vmem [shape: f32[32,32], index: 5, kind: input, shape index: {}]   ;;  %s1300_s6 = inlined_call_operand.vmem [shape: f32[32,1], index: 6, kind: input, shape index: {}]   ;;  %s1301_s7 = inlined_call_operand.vmem [shape: f32[2,32], index: 7, kind: input, shape index: {}]   ;;  %s1302_s8 = inlined_call_operand.vmem [shape: f32[2,1], index: 8, kind: input, shape index: {}]   ;;  %s1303_s9 = inlined_call_operand.hbm [shape: f32[2,512], index: 9, kind: output, shape index: {}]  }
   0x1   :  { %v33_v0 = vld [vmem:[%s1294_s0] sm:$0xff]  ;;  %v34_v1 = vld [vmem:[%s1294_s0 + $0x8] sm:$0xff]  ;;  %153 = vmatprep.mubr.f32.mxu0 %v1101_v4  ;;  %242 = vmatprep.mubr.f32.mxu1 %v1101_v4  ;;  %v42_v7 = vld [vmem:[%s1296_s2 + $0x18] sm:$0xff] }
   0x2   :  { %v65_v2 = vcombine.high %v33_v0, %v33_v0  ;;  %v66_v3 = vcombine.high %v34_v1, %v34_v1  ;;  %v35_v5 = vld [vmem:[%s1295_s1] sm:$0xff]  ;;  %1059 = vset.pattern.permute.xlu0 %v1102_v6  ;;  %1060 = vset.pattern.permute.xlu1 %v1102_v6  ;;  %v40_v8 = vld [vmem:[%s1296_s2 + $0x8] sm:$0xff] }
   0x3   :  { %v36_v9 = vld [vmem:[%s1295_s1 + $0x8] sm:$0xff] }
   0x4   :  { %1021 = vmatprep.subr.msk.mxu0 %vm80_vm0, %v65_v2  ;;  %1027 = vmatprep.subr.msk.mxu1 %vm80_vm0, %v66_v3 }
   0x5   :  { %1022 = vmatpush1.msk.msra.mxu0 %vm80_vm0, %v33_v0  ;;  %1028 = vmatpush1.msk.msra.mxu1 %vm80_vm0, %v34_v1 }
   0x6   :  { %1023 = vmatmul.mubr.msk.f32.vlgmr.msra.gmra.mxu0 %vm67_vm1, %v35_v5  ;;  %1029 = vmatmul.mubr.msk.f32.vlgmr.msra.gmra.mxu1 %vm67_vm1, %v35_v5 }
   0x7   :  { %159 = vmatprep.mubr.f32.mxu0 %v1101_v4  ;;  %248 = vmatprep.mubr.f32.mxu1 %v1101_v4 }
   0x8   :  { %14 = vsyncpa [#allocation3], 0  ;;  %60 = vperm.xlu0 %1059, %v42_v7   ;;  %50 = vperm.xlu1 %1060, %v40_v8   ;;  %v41_v10 = vld [vmem:[%s1296_s2 + $0x10] sm:$0xff]  ;;  %v39_v11 = vld [vmem:[%s1296_s2] sm:$0xff]  ;;  %vm327_vm2 = vcmask 261120  }
   0x9   :  { %v37_v12 = vld [vmem:[%s1295_s1 + $0x10] sm:$0xff]  ;;  %v306_v13 = vld [vmem:[%s1298_s4 + $0x18] sm:$0xff]  ;;  %v304_v16 = vld [vmem:[%s1298_s4 + $0x8] sm:$0xff] }
   0xa   :  { %1024 = vmatmul.mubr.msk.f32.gmra.mxu0 %vm67_vm1, %v36_v9  ;;  %1030 = vmatmul.mubr.msk.f32.gmra.mxu1 %vm67_vm1, %v36_v9  ;;  %v305_v14 = vld [vmem:[%s1298_s4 + $0x10] sm:$0xff]  ;;  %v38_v15 = vld [vmem:[%s1295_s1 + $0x18] sm:$0xff]  ;;  %v303_v17 = vld [vmem:[%s1298_s4] sm:$0xff] }
   0xb   :  { %165 = vmatprep.mubr.f32.mxu0 %v1101_v4  ;;  %254 = vmatprep.mubr.f32.mxu1 %v1101_v4  ;;  %v557_v18 = vld [vmem:[%s1300_s6 + $0x18] sm:$0xff]  ;;  %v556_v19 = vld [vmem:[%s1300_s6 + $0x10] sm:$0xff]  ;;  %v555_v20 = vld [vmem:[%s1300_s6 + $0x8] sm:$0xff] }
   0xc   :  { %55 = vperm.xlu0 %1059, %v41_v10   ;;  %45 = vperm.xlu1 %1060, %v39_v11   ;;  %v554_v21 = vld [vmem:[%s1300_s6] sm:$0xff] }
   0xd   :  { %v801_v22 = vld [vmem:[%s1302_s8] sm:$0x3] }
   0xe   :  { %1025 = vmatmul.mubr.msk.f32.gmra.mxu0 %vm67_vm1, %v37_v12  ;;  %1031 = vmatmul.mubr.msk.f32.gmra.mxu1 %vm67_vm1, %v37_v12 }
   0xf   :  { %171 = vmatprep.mubr.f32.mxu0 %v1101_v4  ;;  %260 = vmatprep.mubr.f32.mxu1 %v1101_v4 }
  0x10   :  { %324 = vperm.xlu0 %1059, %v306_v13   ;;  %319 = vperm.xlu1 %1060, %v305_v14  }
  0x12   :  { %1026 = vmatmul.mubr.msk.f32.gmra.mxu0 %vm67_vm1, %v38_v15  ;;  %1032 = vmatmul.mubr.msk.f32.gmra.mxu1 %vm67_vm1, %v38_v15 }
  0x13   :  { %404 = vmatprep.mubr.f32.mxu0 %v1101_v4  ;;  %493 = vmatprep.mubr.f32.mxu1 %v1101_v4 }
  0x14   :  { %314 = vperm.xlu0 %1059, %v304_v16   ;;  %309 = vperm.xlu1 %1060, %v303_v17  }
  0x18   :  { %575 = vperm.xlu0 %1059, %v557_v18   ;;  %570 = vperm.xlu1 %1060, %v556_v19  }
  0x1c   :  { %565 = vperm.xlu0 %1059, %v555_v20   ;;  %560 = vperm.xlu1 %1060, %v554_v21  }
  0x20   :  { %804 = vperm.xlu0 %1059, %v801_v22  }
  0x83   :  { %v61_v29 = vpop.permute.xlu0 %60  ;;  %v51_v32 = vpop.permute.xlu1 %50 }
  0x87   :  { %v56_v37 = vpop.permute.xlu0 %55  ;;  %v46_v41 = vpop.permute.xlu1 %45 }
  0xc6   :  { %v155_v23 = vpop.f32.mrf.mxu0  ;;  %v244_v24 = vpop.f32.mrf.mxu1 }
  0xc7   :  { %v156_v63 = vadd.f32 %v155_v23, %v46_v41  ;;  %v245_v0 = vadd.f32 %v244_v24, %v46_v41 }
  0xc8   :  { %v157_v25 = vpop.f32.mrf.mxu0  ;;  %v246_v26 = vpop.f32.mrf.mxu1 }
  0xc9   :  { %v158_v45 = vadd.f32 %v157_v25, %v46_v41  ;;  %v247_v59 = vadd.f32 %v246_v26, %v46_v41  ;;  %v267_v16 = vmul.f32 0.01, %v156_v63  ;;  %v269_v17 = vmul.f32 0.01, %v245_v0  ;;  %v320_v41 = vpop.permute.xlu1 %319 }
  0xca   :  { %v161_v27 = vpop.f32.mrf.mxu0  ;;  %v250_v28 = vpop.f32.mrf.mxu1 }
  0xcb   :  { %v162_v46 = vadd.f32 %v161_v27, %v51_v32  ;;  %v251_v55 = vadd.f32 %v250_v28, %v51_v32  ;;  %v268_v12 = vmul.f32 0.01, %v158_v45  ;;  %v270_v13 = vmul.f32 0.01, %v247_v59  ;;  %v299_v28 = vld [vmem:[%s1297_s3] sm:$0xff] }
  0xcc   :  { %v163_v30 = vpop.f32.mrf.mxu0  ;;  %v252_v31 = vpop.f32.mrf.mxu1  ;;  %v283_v26 = vmax.f32 %v156_v63, %v267_v16  ;;  %v285_v27 = vmax.f32 %v245_v0, %v269_v17 }
  0xcd   :  { %v164_v51 = vadd.f32 %v163_v30, %v51_v32  ;;  %v253_v52 = vadd.f32 %v252_v31, %v51_v32  ;;  %v271_v8 = vmul.f32 0.01, %v162_v46  ;;  %v273_v9 = vmul.f32 0.01, %v251_v55  ;;  %v301_v30 = vld [vmem:[%s1297_s3 + $0x10] sm:$0xff]  ;;  %v302_v31 = vld [vmem:[%s1297_s3 + $0x18] sm:$0xff] }
  0xce   :  { %v167_v33 = vpop.f32.mrf.mxu0  ;;  %v256_v34 = vpop.f32.mrf.mxu1  ;;  %v284_v24 = vmax.f32 %v158_v45, %v268_v12  ;;  %v286_v25 = vmax.f32 %v247_v59, %v270_v13 }
  0xcf   :  { %v168_v47 = vadd.f32 %v167_v33, %v56_v37  ;;  %v257_v48 = vadd.f32 %v256_v34, %v56_v37  ;;  %v272_v3 = vmul.f32 0.01, %v164_v51  ;;  %v274_v5 = vmul.f32 0.01, %v253_v52 }
  0xd0   :  { %v169_v35 = vpop.f32.mrf.mxu0  ;;  %v258_v36 = vpop.f32.mrf.mxu1  ;;  %v287_v22 = vmax.f32 %v162_v46, %v271_v8  ;;  %v289_v23 = vmax.f32 %v251_v55, %v273_v9 }
  0xd1   :  { %v170_v38 = vadd.f32 %v169_v35, %v56_v37  ;;  %v259_v42 = vadd.f32 %v258_v36, %v56_v37  ;;  %v275_v1 = vmul.f32 0.01, %v168_v47  ;;  %v277_v2 = vmul.f32 0.01, %v257_v48 }
  0xd2   :  { %v173_v39 = vpop.f32.mrf.mxu0  ;;  %v262_v40 = vpop.f32.mrf.mxu1  ;;  %v288_v20 = vmax.f32 %v164_v51, %v272_v3  ;;  %v290_v21 = vmax.f32 %v253_v52, %v274_v5 }
  0xd3   :  { %v174_v43 = vadd.f32 %v173_v39, %v61_v29  ;;  %v263_v44 = vadd.f32 %v262_v40, %v61_v29  ;;  %v276_v56 = vmul.f32 0.01, %v170_v38  ;;  %v278_v60 = vmul.f32 0.01, %v259_v42  ;;  %v325_v40 = vpop.permute.xlu0 %324 }
  0xd4   :  { %v175_v49 = vpop.f32.mrf.mxu0  ;;  %v264_v50 = vpop.f32.mrf.mxu1  ;;  %v291_v18 = vmax.f32 %v168_v47, %v275_v1  ;;  %v293_v19 = vmax.f32 %v257_v48, %v277_v2 }
  0xd5   :  { %v176_v53 = vadd.f32 %v175_v49, %v61_v29  ;;  %v265_v54 = vadd.f32 %v264_v50, %v61_v29  ;;  %v279_v57 = vmul.f32 0.01, %v174_v43  ;;  %v281_v58 = vmul.f32 0.01, %v263_v44  ;;  %v300_v29 = vld [vmem:[%s1297_s3 + $0x8] sm:$0xff]  ;;  %v310_v50 = vpop.permute.xlu1 %309 }
  0xd6   :  { %v292_v14 = vmax.f32 %v170_v38, %v276_v56  ;;  %v294_v15 = vmax.f32 %v259_v42, %v278_v60 }
  0xd7   :  { %v280_v61 = vmul.f32 0.01, %v176_v53  ;;  %v282_v62 = vmul.f32 0.01, %v265_v54  ;;  %v295_v10 = vmax.f32 %v174_v43, %v279_v57  ;;  %v297_v11 = vmax.f32 %v263_v44, %v281_v58  ;;  %v315_v49 = vpop.permute.xlu0 %314 }
  0xd9   :  { %v296_v6 = vmax.f32 %v176_v53, %v280_v61  ;;  %v298_v7 = vmax.f32 %v265_v54, %v282_v62 }
  0xdb   :  { %364 = vmatprep.subr.mxu0 %v296_v6  ;;  %453 = vmatprep.subr.mxu1 %v298_v7 }
  0xdc   :  { %365 = vmatpush1.msra.mxu0 %v295_v10  ;;  %454 = vmatpush1.msra.mxu1 %v297_v11 }
  0xdd   :  { %366 = vmatprep.subr.mxu0 %v292_v14  ;;  %455 = vmatprep.subr.mxu1 %v294_v15 }
  0xde   :  { %367 = vmatpush1.msra.mxu0 %v291_v18  ;;  %456 = vmatpush1.msra.mxu1 %v293_v19 }
  0xdf   :  { %368 = vmatprep.subr.mxu0 %v288_v20  ;;  %457 = vmatprep.subr.mxu1 %v290_v21 }
  0xe0   :  { %369 = vmatpush1.msra.mxu0 %v287_v22  ;;  %458 = vmatpush1.msra.mxu1 %v289_v23 }
  0xe1   :  { %370 = vmatprep.subr.mxu0 %v284_v24  ;;  %459 = vmatprep.subr.mxu1 %v286_v25 }
  0xe2   :  { %371 = vmatpush1.msra.mxu0 %v283_v26  ;;  %460 = vmatpush1.msra.mxu1 %v285_v27 }
  0xe3   :  { %1033 = vmatmul.mubr.msk.f32.vlgmr.msra.gmra.mxu0 %vm327_vm2, %v299_v28  ;;  %1037 = vmatmul.mubr.msk.f32.vlgmr.msra.gmra.mxu1 %vm327_vm2, %v299_v28 }
  0xe4   :  { %410 = vmatprep.mubr.f32.mxu0 %v1101_v4  ;;  %499 = vmatprep.mubr.f32.mxu1 %v1101_v4 }
  0xe7   :  { %1034 = vmatmul.mubr.msk.f32.gmra.mxu0 %vm327_vm2, %v300_v29  ;;  %1038 = vmatmul.mubr.msk.f32.gmra.mxu1 %vm327_vm2, %v300_v29 }
  0xe8   :  { %416 = vmatprep.mubr.f32.mxu0 %v1101_v4  ;;  %505 = vmatprep.mubr.f32.mxu1 %v1101_v4 }
  0xeb   :  { %1035 = vmatmul.mubr.msk.f32.gmra.mxu0 %vm327_vm2, %v301_v30  ;;  %1039 = vmatmul.mubr.msk.f32.gmra.mxu1 %vm327_vm2, %v301_v30 }
  0xec   :  { %422 = vmatprep.mubr.f32.mxu0 %v1101_v4  ;;  %511 = vmatprep.mubr.f32.mxu1 %v1101_v4 }
  0xef   :  { %1036 = vmatmul.mubr.msk.f32.gmra.mxu0 %vm327_vm2, %v302_v31  ;;  %1040 = vmatmul.mubr.msk.f32.gmra.mxu1 %vm327_vm2, %v302_v31 }
  0xf0   :  { %654 = vmatprep.mubr.f32.mxu0 %v1101_v4  ;;  %743 = vmatprep.mubr.f32.mxu1 %v1101_v4 }
 0x1a3   :  { %v406_v32 = vpop.f32.mrf.mxu0  ;;  %v495_v33 = vpop.f32.mrf.mxu1 }
 0x1a4   :  { %v407_v9 = vadd.f32 %v406_v32, %v310_v50  ;;  %v496_v10 = vadd.f32 %v495_v33, %v310_v50 }
 0x1a5   :  { %v408_v34 = vpop.f32.mrf.mxu0  ;;  %v497_v35 = vpop.f32.mrf.mxu1 }
 0x1a6   :  { %v409_v54 = vadd.f32 %v408_v34, %v310_v50  ;;  %v498_v5 = vadd.f32 %v497_v35, %v310_v50  ;;  %v518_v25 = vmul.f32 0.01, %v407_v9  ;;  %v520_v26 = vmul.f32 0.01, %v496_v10  ;;  %v571_v50 = vpop.permute.xlu1 %570 }
 0x1a7   :  { %v412_v36 = vpop.f32.mrf.mxu0  ;;  %v501_v37 = vpop.f32.mrf.mxu1 }
 0x1a8   :  { %v413_v55 = vadd.f32 %v412_v36, %v315_v49  ;;  %v502_v0 = vadd.f32 %v501_v37, %v315_v49  ;;  %v519_v21 = vmul.f32 0.01, %v409_v54  ;;  %v521_v22 = vmul.f32 0.01, %v498_v5  ;;  %v550_v37 = vld [vmem:[%s1299_s5] sm:$0xff] }
 0x1a9   :  { %v414_v38 = vpop.f32.mrf.mxu0  ;;  %v503_v39 = vpop.f32.mrf.mxu1  ;;  %v534_v35 = vmax.f32 %v407_v9, %v518_v25  ;;  %v536_v36 = vmax.f32 %v496_v10, %v520_v26 }
 0x1aa   :  { %v415_v60 = vadd.f32 %v414_v38, %v315_v49  ;;  %v504_v61 = vadd.f32 %v503_v39, %v315_v49  ;;  %v522_v17 = vmul.f32 0.01, %v413_v55  ;;  %v524_v18 = vmul.f32 0.01, %v502_v0  ;;  %v551_v38 = vld [vmem:[%s1299_s5 + $0x8] sm:$0xff]  ;;  %v552_v39 = vld [vmem:[%s1299_s5 + $0x10] sm:$0xff]  ;;  %v576_v49 = vpop.permute.xlu0 %575 }
 0x1ab   :  { %v418_v42 = vpop.f32.mrf.mxu0  ;;  %v507_v43 = vpop.f32.mrf.mxu1  ;;  %v535_v33 = vmax.f32 %v409_v54, %v519_v21  ;;  %v537_v34 = vmax.f32 %v498_v5, %v521_v22 }
 0x1ac   :  { %v419_v56 = vadd.f32 %v418_v42, %v320_v41  ;;  %v508_v57 = vadd.f32 %v507_v43, %v320_v41  ;;  %v523_v13 = vmul.f32 0.01, %v415_v60  ;;  %v525_v14 = vmul.f32 0.01, %v504_v61 }
 0x1ad   :  { %v420_v44 = vpop.f32.mrf.mxu0  ;;  %v509_v45 = vpop.f32.mrf.mxu1  ;;  %v538_v31 = vmax.f32 %v413_v55, %v522_v17  ;;  %v540_v32 = vmax.f32 %v502_v0, %v524_v18 }
 0x1ae   :  { %v421_v46 = vadd.f32 %v420_v44, %v320_v41  ;;  %v510_v51 = vadd.f32 %v509_v45, %v320_v41  ;;  %v526_v11 = vmul.f32 0.01, %v419_v56  ;;  %v528_v12 = vmul.f32 0.01, %v508_v57 }
 0x1af   :  { %v424_v47 = vpop.f32.mrf.mxu0  ;;  %v513_v48 = vpop.f32.mrf.mxu1  ;;  %v539_v29 = vmax.f32 %v415_v60, %v523_v13  ;;  %v541_v30 = vmax.f32 %v504_v61, %v525_v14 }
 0x1b0   :  { %v425_v52 = vadd.f32 %v424_v47, %v325_v40  ;;  %v514_v53 = vadd.f32 %v513_v48, %v325_v40  ;;  %v527_v1 = vmul.f32 0.01, %v421_v46  ;;  %v529_v6 = vmul.f32 0.01, %v510_v51 }
 0x1b1   :  { %v426_v58 = vpop.f32.mrf.mxu0  ;;  %v515_v59 = vpop.f32.mrf.mxu1  ;;  %v542_v27 = vmax.f32 %v419_v56, %v526_v11  ;;  %v544_v28 = vmax.f32 %v508_v57, %v528_v12 }
 0x1b2   :  { %v427_v62 = vadd.f32 %v426_v58, %v325_v40  ;;  %v516_v63 = vadd.f32 %v515_v59, %v325_v40  ;;  %v530_v2 = vmul.f32 0.01, %v425_v52  ;;  %v532_v3 = vmul.f32 0.01, %v514_v53  ;;  %v553_v40 = vld [vmem:[%s1299_s5 + $0x18] sm:$0xff]  ;;  %v566_v58 = vpop.permute.xlu0 %565  ;;  %v561_v59 = vpop.permute.xlu1 %560 }
 0x1b3   :  { %v543_v23 = vmax.f32 %v421_v46, %v527_v1  ;;  %v545_v24 = vmax.f32 %v510_v51, %v529_v6 }
 0x1b4   :  { %v531_v7 = vmul.f32 0.01, %v427_v62  ;;  %v533_v8 = vmul.f32 0.01, %v516_v63  ;;  %v546_v19 = vmax.f32 %v425_v52, %v530_v2  ;;  %v548_v20 = vmax.f32 %v514_v53, %v532_v3 }
 0x1b6   :  { %v547_v15 = vmax.f32 %v427_v62, %v531_v7  ;;  %v549_v16 = vmax.f32 %v516_v63, %v533_v8 }
 0x1b8   :  { %614 = vmatprep.subr.mxu0 %v547_v15  ;;  %703 = vmatprep.subr.mxu1 %v549_v16 }
 0x1b9   :  { %615 = vmatpush1.msra.mxu0 %v546_v19  ;;  %704 = vmatpush1.msra.mxu1 %v548_v20 }
 0x1ba   :  { %616 = vmatprep.subr.mxu0 %v543_v23  ;;  %705 = vmatprep.subr.mxu1 %v545_v24 }
 0x1bb   :  { %617 = vmatpush1.msra.mxu0 %v542_v27  ;;  %706 = vmatpush1.msra.mxu1 %v544_v28 }
 0x1bc   :  { %618 = vmatprep.subr.mxu0 %v539_v29  ;;  %707 = vmatprep.subr.mxu1 %v541_v30 }
 0x1bd   :  { %619 = vmatpush1.msra.mxu0 %v538_v31  ;;  %708 = vmatpush1.msra.mxu1 %v540_v32 }
 0x1be   :  { %620 = vmatprep.subr.mxu0 %v535_v33  ;;  %709 = vmatprep.subr.mxu1 %v537_v34 }
 0x1bf   :  { %621 = vmatpush1.msra.mxu0 %v534_v35  ;;  %710 = vmatpush1.msra.mxu1 %v536_v36 }
 0x1c0   :  { %1041 = vmatmul.mubr.msk.f32.vlgmr.msra.gmra.mxu0 %vm327_vm2, %v550_v37  ;;  %1045 = vmatmul.mubr.msk.f32.vlgmr.msra.gmra.mxu1 %vm327_vm2, %v550_v37 }
 0x1c1   :  { %660 = vmatprep.mubr.f32.mxu0 %v1101_v4  ;;  %749 = vmatprep.mubr.f32.mxu1 %v1101_v4 }
 0x1c4   :  { %1042 = vmatmul.mubr.msk.f32.gmra.mxu0 %vm327_vm2, %v551_v38  ;;  %1046 = vmatmul.mubr.msk.f32.gmra.mxu1 %vm327_vm2, %v551_v38 }
 0x1c5   :  { %666 = vmatprep.mubr.f32.mxu0 %v1101_v4  ;;  %755 = vmatprep.mubr.f32.mxu1 %v1101_v4 }
 0x1c8   :  { %1043 = vmatmul.mubr.msk.f32.gmra.mxu0 %vm327_vm2, %v552_v39  ;;  %1047 = vmatmul.mubr.msk.f32.gmra.mxu1 %vm327_vm2, %v552_v39 }
 0x1c9   :  { %672 = vmatprep.mubr.f32.mxu0 %v1101_v4  ;;  %761 = vmatprep.mubr.f32.mxu1 %v1101_v4 }
 0x1cc   :  { %1044 = vmatmul.mubr.msk.f32.gmra.mxu0 %vm327_vm2, %v553_v40  ;;  %1048 = vmatmul.mubr.msk.f32.gmra.mxu1 %vm327_vm2, %v553_v40 }
 0x1cd   :  { %874 = vmatprep.mubr.f32.mxu0 %v1101_v4  ;;  %945 = vmatprep.mubr.f32.mxu1 %v1101_v4 }
 0x280   :  { %v656_v41 = vpop.f32.mrf.mxu0  ;;  %v745_v42 = vpop.f32.mrf.mxu1 }
 0x281   :  { %v657_v17 = vadd.f32 %v656_v41, %v561_v59  ;;  %v746_v18 = vadd.f32 %v745_v42, %v561_v59 }
 0x282   :  { %v658_v43 = vpop.f32.mrf.mxu0  ;;  %v747_v44 = vpop.f32.mrf.mxu1 }
 0x283   :  { %v659_v62 = vadd.f32 %v658_v43, %v561_v59  ;;  %v748_v13 = vadd.f32 %v747_v44, %v561_v59  ;;  %v768_v33 = vmul.f32 0.01, %v657_v17  ;;  %v770_v34 = vmul.f32 0.01, %v746_v18 }
 0x284   :  { %v662_v45 = vpop.f32.mrf.mxu0  ;;  %v751_v46 = vpop.f32.mrf.mxu1 }
 0x285   :  { %v663_v63 = vadd.f32 %v662_v45, %v566_v58  ;;  %v752_v9 = vadd.f32 %v751_v46, %v566_v58  ;;  %v769_v29 = vmul.f32 0.01, %v659_v62  ;;  %v771_v30 = vmul.f32 0.01, %v748_v13  ;;  %v800_v45 = vld [vmem:[%s1301_s7] sm:$0x3]  ;;  %v805_v46 = vpop.permute.xlu0 %804 }
 0x286   :  { %v664_v47 = vpop.f32.mrf.mxu0  ;;  %v753_v48 = vpop.f32.mrf.mxu1  ;;  %v784_v43 = vmax.f32 %v657_v17, %v768_v33  ;;  %v786_v44 = vmax.f32 %v746_v18, %v770_v34  ;;  %s1104_s7 = smov [#allocation2]  }
 0x287   :  { %v665_v5 = vadd.f32 %v664_v47, %v566_v58  ;;  %v754_v6 = vadd.f32 %v753_v48, %v566_v58  ;;  %v772_v25 = vmul.f32 0.01, %v663_v63  ;;  %v774_v26 = vmul.f32 0.01, %v752_v9  ;;  %s1013_s13 = sshll.u32 %s1104_s7, 4  ;;  %s1014_s13 = int_to_ptr.vmem [resolvable:$true] %s1013_s13 }
 0x288   :  { %v668_v51 = vpop.f32.mrf.mxu0  ;;  %v757_v52 = vpop.f32.mrf.mxu1  ;;  %v785_v41 = vmax.f32 %v659_v62, %v769_v29  ;;  %v787_v42 = vmax.f32 %v748_v13, %v771_v30  ;;  %s1079_s1 = scalar_lea.vmem %s1014_s13, 128  ;;  %p1084_p1 = scmp.lt.s32.totalorder %s1014_s13, %s1014_s13 }
 0x289   :  { %v669_v0 = vadd.f32 %v668_v51, %v571_v50  ;;  %v758_v1 = vadd.f32 %v757_v52, %v571_v50  ;;  %v773_v21 = vmul.f32 0.01, %v665_v5  ;;  %v775_v22 = vmul.f32 0.01, %v754_v6  ;;  %p1080_p0 = scmp.ne.s32.totalorder %s1014_s13, %s1079_s1  ;;  %p1085_p2 = scmp.lt.s32.totalorder %s1079_s1, %s1079_s1 }
 0x28a   :  { %v670_v53 = vpop.f32.mrf.mxu0  ;;  %v759_v54 = vpop.f32.mrf.mxu1  ;;  %v788_v39 = vmax.f32 %v663_v63, %v772_v25  ;;  %v790_v40 = vmax.f32 %v752_v9, %v774_v26 }
 0x28b   :  { %v671_v55 = vadd.f32 %v670_v53, %v571_v50  ;;  %v760_v4 = vadd.f32 %v759_v54, %v571_v50  ;;  %v776_v19 = vmul.f32 0.01, %v669_v0  ;;  %v778_v20 = vmul.f32 0.01, %v758_v1  ;;  %p1086_p3 = por %p1085_p2, %p1084_p1 }
 0x28c   :  { %v674_v56 = vpop.f32.mrf.mxu0  ;;  %v763_v57 = vpop.f32.mrf.mxu1  ;;  %v789_v37 = vmax.f32 %v665_v5, %v773_v21  ;;  %v791_v38 = vmax.f32 %v754_v6, %v775_v22  ;;  %v993_v5 = vlaneseq }
 0x28d   :  { %v675_v60 = vadd.f32 %v674_v56, %v576_v49  ;;  %v764_v61 = vadd.f32 %v763_v57, %v576_v49  ;;  %v777_v10 = vmul.f32 0.01, %v671_v55  ;;  %v779_v14 = vmul.f32 0.01, %v760_v4  ;;  %p1087_p4 = pnand %p1086_p3, %p1080_p0 }
 0x28e   :  { %v676_v2 = vpop.f32.mrf.mxu0  ;;  %v765_v3 = vpop.f32.mrf.mxu1  ;;  %v792_v35 = vmax.f32 %v669_v0, %v776_v19  ;;  %v794_v36 = vmax.f32 %v758_v1, %v778_v20 }
 0x28f   :  { %v677_v7 = vadd.f32 %v676_v2, %v576_v49  ;;  %v766_v8 = vadd.f32 %v765_v3, %v576_v49  ;;  %v780_v11 = vmul.f32 0.01, %v675_v60  ;;  %v782_v12 = vmul.f32 0.01, %v764_v61 }
 0x290   :  { %v793_v31 = vmax.f32 %v671_v55, %v777_v10  ;;  %v795_v32 = vmax.f32 %v760_v4, %v779_v14  ;;  %v1103_v2 = vmov 1983009808   ;;  %v994_v10 = vshrl.u32 %v993_v5, 7 }
 0x291   :  { %v781_v15 = vmul.f32 0.01, %v677_v7  ;;  %v783_v16 = vmul.f32 0.01, %v766_v8  ;;  %v796_v27 = vmax.f32 %v675_v60, %v780_v11  ;;  %v798_v28 = vmax.f32 %v764_v61, %v782_v12 }
 0x292   :  { %v991_v3 = vunpack.c.l.s4 %v1103_v2 }
 0x293   :  { %v797_v23 = vmax.f32 %v677_v7, %v781_v15  ;;  %v799_v24 = vmax.f32 %v766_v8, %v783_v16 }
 0x294   :  { %v992_v9 = vunpack.c.0.s8 %v991_v3 }
 0x295   :  { %834 = vmatprep.subr.mxu0 %v797_v23  ;;  %905 = vmatprep.subr.mxu1 %v799_v24 }
 0x296   :  { %835 = vmatpush1.msra.mxu0 %v796_v27  ;;  %906 = vmatpush1.msra.mxu1 %v798_v28  ;;  %v995_v18 = vsub.s32 %v992_v9, %v994_v10 }
 0x297   :  { %836 = vmatprep.subr.mxu0 %v793_v31  ;;  %907 = vmatprep.subr.mxu1 %v795_v32 }
 0x298   :  { %837 = vmatpush1.msra.mxu0 %v792_v35  ;;  %908 = vmatpush1.msra.mxu1 %v794_v36 }
 0x299   :  { %838 = vmatprep.subr.mxu0 %v789_v37  ;;  %909 = vmatprep.subr.mxu1 %v791_v38 }
 0x29a   :  { %839 = vmatpush1.msra.mxu0 %v788_v39  ;;  %910 = vmatpush1.msra.mxu1 %v790_v40 }
 0x29b   :  { %840 = vmatprep.subr.mxu0 %v785_v41  ;;  %911 = vmatprep.subr.mxu1 %v787_v42 }
 0x29c   :  { %841 = vmatpush1.msra.mxu0 %v784_v43  ;;  %912 = vmatpush1.msra.mxu1 %v786_v44 }
 0x29d   :  { %1049 = vmatmul.mubr.msk.f32.vlgmr.msra.gmra.mxu0 %vm327_vm2, %v800_v45  ;;  %1050 = vmatmul.mubr.msk.f32.vlgmr.msra.gmra.mxu1 %vm327_vm2, %v800_v45 }
 0x35d   :  { %v876_v47 = vpop.f32.mrf.mxu0  ;;  %v947_v48 = vpop.f32.mrf.mxu1 }
 0x35e   :  { %v877_v49 = vadd.f32 %v876_v47, %v805_v46  ;;  %v948_v50 = vadd.f32 %v947_v48, %v805_v46 }
 0x35f   :  { %v878_v51 = vpop.f32.mrf.mxu0  ;;  %v949_v52 = vpop.f32.mrf.mxu1 }
 0x360   :  { %v1051_v53 = vmul.f32 -1.442695, %v877_v49  ;;  %v1053_v54 = vmul.f32 -1.442695, %v948_v50  ;;  %v879_v55 = vadd.f32 %v878_v51, %v805_v46  ;;  %v950_v56 = vadd.f32 %v949_v52, %v805_v46 }
 0x362   :  { %1063 = vpow2.f32 %v1051_v53  ;;  %v1052_v57 = vmul.f32 -1.442695, %v879_v55  ;;  %v1054_v58 = vmul.f32 -1.442695, %v950_v56 }
 0x363   :  { %1065 = vpow2.f32 %v1053_v54 }
 0x364   :  { %1067 = vpow2.f32 %v1052_v57 }
 0x365   :  { %1069 = vpow2.f32 %v1054_v58 }
 0x36f   :  { %v1064_v59 = vpop.eup %1063 }
 0x370   :  { %v1066_v4 = vpop.eup %1065  ;;  %v964_v60 = vadd.f32 1.0, %v1064_v59 }
 0x371   :  { %v1068_v61 = vpop.eup %1067  ;;  %v966_v62 = vadd.f32 1.0, %v1066_v4 }
 0x372   :  { %v1070_v63 = vpop.eup %1069  ;;  %1071 = vrcp.f32 %v964_v60  ;;  %v965_v0 = vadd.f32 1.0, %v1068_v61 }
 0x373   :  { %1073 = vrcp.f32 %v966_v62  ;;  %v967_v1 = vadd.f32 1.0, %v1070_v63 }
 0x374   :  { %1075 = vrcp.f32 %v965_v0 }
 0x375   :  { %1077 = vrcp.f32 %v967_v1 }
 0x37f   :  { %v1072_v6 = vpop.eup %1071 }
 0x380   :  { %v1074_v7 = vpop.eup %1073  ;;  %v976_v8 = vmul.f32 0.9, %v1072_v6 }
 0x381   :  { %v1076_v11 = vpop.eup %1075  ;;  %v978_v12 = vmul.f32 0.9, %v1074_v7 }
 0x382   :  { %v1078_v13 = vpop.eup %1077  ;;  %v977_v14 = vmul.f32 0.9, %v1076_v11  ;;  %v980_v16 = vadd.f32 0.1, %v976_v8 }
 0x383   :  { %v979_v15 = vmul.f32 0.9, %v1078_v13  ;;  %v982_v19 = vadd.f32 0.1, %v978_v12 }
 0x384   :  { %v981_v17 = vadd.f32 0.1, %v977_v14 }
 0x385   :  { %v983_v20 = vadd.f32 0.1, %v979_v15 }
 0x386   :  { %v988_v21 = vcombine.low %v980_v16, %v981_v17 }
 0x387   :  { %v989_v22 = vcombine.low %v982_v19, %v983_v20 }
 0x388   :  { %v996_v23 = vrot.slane %v988_v21, %v995_v18 }
 0x389   :  { %v1003_v24 = vrot.slane %v989_v22, %v995_v18 }
 0x38b   :  { %v1004_v25 = vcombine.low %v996_v23, %v1003_v24 }
 0x38d   :  { %1006 = vst [vmem:[#allocation2] sm:$0xff] %v1004_v25 }
 0x38e   :  { %1090 = shalt.err (!%p1087_p4)
}
 0x38f   :  { %1016 = dma.vmem_to_hbm [thread:$0]  %s1014_s13, 128, %s1303_s9, [#allocation3]  }
 0x390   :  { %1099 = dma.done.wait [#allocation3], 128  }
 0x391   :  { %1100 = vsyncadd [#allocation3], 4294967168 }
 0x392   :  { %1020 = vsyncpa [#allocation3], 1 }

</bundles_post_ra>
